<compile_context>
chip_gen: v7x
topology: tpu7x:2x2x1
jax: 0.10.0
libtpu: 0.0.40
codegen_flags: <defaults>
</compile_context>

<pallas_src>
import functools

import jax
import jax.numpy as jnp
from jax.experimental import pallas as pl
from jax.experimental.pallas import tpu as pltpu


# ------------------------------ small helpers --------------------------------
def _round_up(n, m):
    return ((n + m - 1) // m) * m


def _pad2d(x, rows, cols):
    return jnp.pad(x, ((0, rows - x.shape[0]), (0, cols - x.shape[1])))


def _largest_divisor(dim, candidates, fallback):
    for c in candidates:
        if dim % c == 0:
            return c
    return fallback


@functools.lru_cache(maxsize=None)
def _tpu_budget():
    """(vmem_limit_bytes, fuse_max_nodes) tuned per TPU generation.

    v5e/v6e: 128 MiB VMEM, single TensorCore -> large scoped budget and an
    aggressive fully-fused threshold (a_hat read from HBM once for BOTH layers).
    v7x-class: 64 MiB VMEM per core but 2 TensorCores -> keep headroom and hand
    mid-size graphs to the tiled path, whose "parallel" row axis shards across
    both cores.
    """
    cap = 64 * 1024 * 1024
    try:
        cap = int(pltpu.get_tpu_info().vmem_capacity_bytes)
    except Exception:
        pass
    if cap >= 100 * 1024 * 1024:          # 128 MiB class (v5e / v6e)
        return 100 * 1024 * 1024, 2048
    return 48 * 1024 * 1024, 1024         # 64 MiB class (v7x)


# --------------------- fused two-layer kernel (small N) ----------------------
def fused_gcn_kernel(a_ref, x_ref, w1_ref, b1_ref, w2_ref, b2_ref, o_ref):
    a = a_ref[...]
    # layer 1: a_hat @ (x @ W1) + b1, ReLU
    h = jnp.dot(x_ref[...], w1_ref[...], preferred_element_type=jnp.float32)
    h = jnp.dot(a, h.astype(jnp.bfloat16), preferred_element_type=jnp.float32)
    h = jnp.maximum(h + b1_ref[...], 0.0)
    # TODO(synk): training-mode dropout (pltpu.prng_random_bits mask); eval -> identity.
    # layer 2: a_hat @ (h @ W2) + b2
    g = jnp.dot(h.astype(jnp.bfloat16), w2_ref[...], preferred_element_type=jnp.float32)
    g = jnp.dot(a, g.astype(jnp.bfloat16), preferred_element_type=jnp.float32)
    o_ref[...] = (g + b2_ref[...]).astype(o_ref.dtype)


def fused_gcn(a, x, w1, b1, w2, b2, *, vmem_limit):
    n = a.shape[0]
    c = w2.shape[1]
    vmem = pl.BlockSpec(memory_space=pltpu.MemorySpace.VMEM)
    return pl.pallas_call(
        fused_gcn_kernel,
        out_shape=jax.ShapeDtypeStruct((n, c), jnp.float32),
        in_specs=[vmem] * 6,
        out_specs=vmem,
        compiler_params=pltpu.CompilerParams(vmem_limit_bytes=vmem_limit),
    )(a, x, w1, b1, w2, b2)


# ----------------------- tiled kernels (general N) ---------------------------
def linear_kernel(x_ref, w_ref, o_ref):
    o_ref[...] = jnp.dot(
        x_ref[...], w_ref[...], preferred_element_type=jnp.float32
    ).astype(o_ref.dtype)


def linear(x, w, *, out_dtype, vmem_limit):
    """H = X @ W, row-tiled. Tiny next to the N^2 aggregation -> big row tiles."""
    n, k = x.shape
    _, m = w.shape
    tm = _largest_divisor(n, (1024, 512, 256), 256)
    return pl.pallas_call(
        linear_kernel,
        out_shape=jax.ShapeDtypeStruct((n, m), out_dtype),
        grid=(n // tm,),
        in_specs=[
            pl.BlockSpec((tm, k), lambda i: (i, 0)),
            pl.BlockSpec((k, m), lambda i: (0, 0)),
        ],
        out_specs=pl.BlockSpec((tm, m), lambda i: (i, 0)),
        compiler_params=pltpu.CompilerParams(
            dimension_semantics=("parallel",),
            vmem_limit_bytes=vmem_limit,
        ),
    )(x, w)


def aggregate_kernel(a_ref, h_ref, b_ref, o_ref, acc_ref, *, apply_relu):
    @pl.when(pl.program_id(2) == 0)
    def _():
        acc_ref[...] = jnp.zeros_like(acc_ref)

    acc_ref[...] += jnp.dot(
        a_ref[...], h_ref[...], preferred_element_type=jnp.float32
    )

    @pl.when(pl.program_id(2) == pl.num_programs(2) - 1)
    def _():
        out = acc_ref[...] + b_ref[...]
        if apply_relu:
            out = jnp.maximum(out, 0.0)
        o_ref[...] = out.astype(o_ref.dtype)


def aggregate(a_hat, h, b, *, apply_relu, out_dtype, vmem_limit):
    """out = a_hat @ H + b (ReLU optional), k-tiled with f32 VMEM accumulator."""
    n, k = a_hat.shape
    _, m = h.shape
    # n is padded to a multiple of 256 -> MXU-shaped 256-row tiles.
    tm = 256
    tn = _largest_divisor(m, (256, 128), 128)
    # HBM-bound on the N^2 a_hat stream: make k tiles as large as possible so
    # DMAs are big and per-grid-step overhead (~0.35 us) is negligible.
    tk = k if k <= 2048 else _largest_divisor(k, (2048, 1024, 512, 256), 256)
    gi, gj, gk = n // tm, m // tn, k // tk
    flops = 2 * n * k * m
    bytes_accessed = (
        gj * n * k * a_hat.dtype.itemsize      # A re-read once per output col tile
        + gi * k * m * h.dtype.itemsize        # H re-read once per output row tile
        + n * m * jnp.dtype(out_dtype).itemsize
        + m * b.dtype.itemsize
    )
    return pl.pallas_call(
        functools.partial(aggregate_kernel, apply_relu=apply_relu),
        out_shape=jax.ShapeDtypeStruct((n, m), out_dtype),
        grid=(gi, gj, gk),
        in_specs=[
            pl.BlockSpec((tm, tk), lambda i, j, kk: (i, kk)),
            pl.BlockSpec((tk, tn), lambda i, j, kk: (kk, j)),
            pl.BlockSpec((1, tn), lambda i, j, kk: (0, j)),
        ],
        out_specs=pl.BlockSpec((tm, tn), lambda i, j, kk: (i, j)),
        scratch_shapes=[pltpu.VMEM((tm, tn), jnp.float32)],
        compiler_params=pltpu.CompilerParams(
            dimension_semantics=("parallel", "parallel", "arbitrary"),
            vmem_limit_bytes=vmem_limit,
        ),
        cost_estimate=pl.CostEstimate(
            flops=flops, transcendentals=0, bytes_accessed=bytes_accessed
        ),
    )(a_hat, h, b)


# ------------------------------- JAX glue ------------------------------------
def normalized_adjacency(edge_index, num_nodes):
    """Dense D^{-1/2} (A [+ missing self loops]) D^{-1/2}, matching PyG gcn_norm:
    multi-edges counted via scatter-add; self loop added only where absent."""
    src, dst = edge_index[0], edge_index[1]
    adj = jnp.zeros((num_nodes, num_nodes), jnp.float32)
    adj = adj.at[dst, src].add(1.0)  # a[dst, src] += 1 (keeps multiplicities)
    diag = jnp.diagonal(adj)
    adj = adj + jnp.diag(jnp.where(diag > 0, 0.0, 1.0))  # add self loop if absent
    deg = adj.sum(axis=1)
    dinv = jnp.where(deg > 0, jax.lax.rsqrt(deg), 0.0)
    return dinv[:, None] * adj * dinv[None, :]


def gcn_forward(x, edge_index, params, *, fuse_max_nodes=None):
    n, f_in = x.shape
    h_dim = params["w1"].shape[1]
    c_dim = params["w2"].shape[1]

    vmem_limit, fuse_default = _tpu_budget()
    if fuse_max_nodes is None:
        fuse_max_nodes = fuse_default

    a_hat = normalized_adjacency(edge_index, n)

    # Pad the node dim to the aggregation tile granularity (256; 512 for large
    # graphs so tk stays >= 512) and lane dims to x128; cast MXU inputs to bf16
    # (halves the dominant N^2 HBM traffic; MXU accumulation stays f32).
    node_gran = 256 if n <= 2048 else 512
    np_ = _round_up(n, node_gran)
    fin_p = _round_up(f_in, 128)
    h_p = _round_up(h_dim, 128)
    c_p = _round_up(c_dim, 128)

    # TODO(synk): shrink a_p further (fp8 e4m3 on v7x; int8 counts + f32 dinv
    # factorization on v5e/v6e) to halve the A stream again vs bf16.
    a_p = _pad2d(a_hat, np_, np_).astype(jnp.bfloat16)
    x_p = _pad2d(x, np_, fin_p).astype(jnp.bfloat16)
    w1_p = _pad2d(params["w1"], fin_p, h_p).astype(jnp.bfloat16)
    w2_p = _pad2d(params["w2"], h_p, c_p).astype(jnp.bfloat16)
    b1_p = _pad2d(params["b1"], 1, h_p).astype(jnp.float32)
    b2_p = _pad2d(params["b2"], 1, c_p).astype(jnp.float32)

    # NOTE: padded node rows pick up bias+ReLU garbage in H; this is harmless
    # ONLY because a_p's padded columns are zero (those rows never contribute)
    # and the final slice drops the padded rows. Keep it that way when editing
    # (e.g. adding training-mode dropout / residuals / readout over all rows).
    small = np_ <= fuse_max_nodes and max(fin_p, h_p, c_p) <= 512
    if small:
        # one kernel: a_hat read from HBM once, h never leaves VMEM.
        out_p = fused_gcn(a_p, x_p, w1_p, b1_p, w2_p, b2_p, vmem_limit=vmem_limit)
    else:
        # layer 1: H = X @ W1 (once), then tiled aggregation + bias + ReLU.
        h = linear(x_p, w1_p, out_dtype=jnp.bfloat16, vmem_limit=vmem_limit)
        h = aggregate(a_p, h, b1_p, apply_relu=True, out_dtype=jnp.bfloat16,
                      vmem_limit=vmem_limit)
        # F.dropout(p=0.5, training): eval mode -> identity.
        # layer 2
        g = linear(h, w2_p, out_dtype=jnp.bfloat16, vmem_limit=vmem_limit)
        out_p = aggregate(a_p, g, b2_p, apply_relu=False, out_dtype=jnp.float32,
                          vmem_limit=vmem_limit)

    return out_p[:n, :c_dim]


def gcn_reference(x, edge_index, params):
    """Pure-JAX f32 reference for sanity checking the kernels."""
    a_hat = normalized_adjacency(edge_index, x.shape[0])
    h = jnp.maximum(a_hat @ (x @ params["w1"]) + params["b1"], 0.0)
    return a_hat @ (h @ params["w2"]) + params["b2"]


def init_params(key, num_features, hidden_channels, num_classes):
    k1, k2 = jax.random.split(key)

    def glorot(k, fan_in, fan_out):
        lim = jnp.sqrt(6.0 / (fan_in + fan_out))
        return jax.random.uniform(k, (fan_in, fan_out), jnp.float32, -lim, lim)

    return {
        "w1": glorot(k1, num_features, hidden_channels),
        "b1": jnp.zeros((1, hidden_channels), jnp.float32),
        "w2": glorot(k2, hidden_channels, num_classes),
        "b2": jnp.zeros((1, num_classes), jnp.float32),
    }


# --------------------------------- main --------------------------------------
if __name__ == "__main__":
    key = jax.random.PRNGKey(0)
    kx, ke, kp, kx2, ke2, kp2 = jax.random.split(key, 6)

    # ---- small graph: exercises the fused single-kernel path ----------------
    num_nodes, num_features, hidden_channels, num_classes, num_edges = 32, 16, 32, 4, 64
    x = jax.random.normal(kx, (num_nodes, num_features), jnp.float32)
    edge_index = jax.random.randint(ke, (2, num_edges), 0, num_nodes, jnp.int32)
    params = init_params(kp, num_features, hidden_channels, num_classes)

    fwd_fused = jax.jit(gcn_forward)
    out_small = fwd_fused(x, edge_index, params)
    jax.block_until_ready(out_small)
    assert out_small.shape == (num_nodes, num_classes)
    ref_small = gcn_reference(x, edge_index, params)
    assert bool(jnp.allclose(out_small, ref_small, atol=0.1, rtol=0.1))

    # ---- larger graph: exercises the tiled (linear + k-accumulated) path ----
    n2, f2, h2, c2, e2 = 640, 48, 64, 7, 2560
    x2 = jax.random.normal(kx2, (n2, f2), jnp.float32)
    edge_index2 = jax.random.randint(ke2, (2, e2), 0, n2, jnp.int32)
    params2 = init_params(kp2, f2, h2, c2)

    fwd_tiled = jax.jit(functools.partial(gcn_forward, fuse_max_nodes=0))
    out_big = fwd_tiled(x2, edge_index2, params2)
    jax.block_until_ready(out_big)
    assert out_big.shape == (n2, c2)
    ref_big = gcn_reference(x2, edge_index2, params2)
    assert bool(jnp.allclose(out_big, ref_big, atol=0.1, rtol=0.1))

    print("KERNEL_OK")
</pallas_src>

<mosaic_0001>
module attributes {stable_mosaic.version = 11 : i64} {
  func.func private @main(%arg0: i32) attributes {dimension_semantics = [#tpu.dimension_semantics<core_parallel>], iteration_bounds = array<i64: 2>, tpu.core_type = #tpu.core_type<sc_scalar_subcore>, window_params = []} {
    return
  }
}

module attributes {stable_mosaic.version = 11 : i64} {
  func.func private @main(%arg0: i32) attributes {dimension_semantics = [#tpu.dimension_semantics<core_parallel>], iteration_bounds = array<i64: 2>, tpu.core_type = #tpu.core_type<sc_scalar_subcore>, window_params = []} {
    return
  }
}

module attributes {stable_mosaic.version = 11 : i64} {
  func.func @fused_gcn_kernel(%arg0: memref<256x256xbf16, #tpu.memory_space<vmem>>, %arg1: memref<256x128xbf16, #tpu.memory_space<vmem>>, %arg2: memref<128x128xbf16, #tpu.memory_space<vmem>>, %arg3: memref<1x128xf32, #tpu.memory_space<vmem>>, %arg4: memref<128x128xbf16, #tpu.memory_space<vmem>>, %arg5: memref<1x128xf32, #tpu.memory_space<vmem>>, %arg6: memref<256x128xf32, #tpu.memory_space<vmem>>) attributes {dimension_semantics = [], scalar_prefetch = 0 : i64, scratch_operands = 0 : i64, tpu.core_type = #tpu.core_type<tc>} {
    %c0 = arith.constant 0 : index
    %c0_0 = arith.constant 0 : index
    %0 = vector.load %arg0[%c0, %c0_0] : memref<256x256xbf16, #tpu.memory_space<vmem>>, vector<256x256xbf16>
    %c0_1 = arith.constant 0 : index
    %c0_2 = arith.constant 0 : index
    %1 = vector.load %arg1[%c0_1, %c0_2] : memref<256x128xbf16, #tpu.memory_space<vmem>>, vector<256x128xbf16>
    %c0_3 = arith.constant 0 : index
    %c0_4 = arith.constant 0 : index
    %2 = vector.load %arg2[%c0_3, %c0_4] : memref<128x128xbf16, #tpu.memory_space<vmem>>, vector<128x128xbf16>
    %cst = arith.constant dense<0.000000e+00> : vector<256x128xf32>
    %3 = tpu.matmul %1, %2, %cst {dimension_numbers = #tpu.dot_dimension_numbers<[1], [0], [0], [1], [0, 0, 1, 1], [], []>} : vector<256x128xbf16>, vector<128x128xbf16>, vector<256x128xf32> -> vector<256x128xf32>
    %4 = arith.truncf %3 : vector<256x128xf32> to vector<256x128xbf16>
    %cst_5 = arith.constant dense<0.000000e+00> : vector<256x128xf32>
    %5 = tpu.matmul %0, %4, %cst_5 {dimension_numbers = #tpu.dot_dimension_numbers<[1], [0], [0], [1], [0, 0, 1, 1], [], []>} : vector<256x256xbf16>, vector<256x128xbf16>, vector<256x128xf32> -> vector<256x128xf32>
    %c0_6 = arith.constant 0 : index
    %c0_7 = arith.constant 0 : index
    %6 = vector.load %arg3[%c0_6, %c0_7] : memref<1x128xf32, #tpu.memory_space<vmem>>, vector<1x128xf32>
    %7 = vector.broadcast %6 : vector<1x128xf32> to vector<256x128xf32>
    %8 = arith.addf %5, %7 : vector<256x128xf32>
    %cst_8 = arith.constant 0.000000e+00 : f32
    %9 = vector.broadcast %cst_8 : f32 to vector<256x128xf32>
    %10 = arith.maximumf %8, %9 : vector<256x128xf32>
    %11 = arith.truncf %10 : vector<256x128xf32> to vector<256x128xbf16>
    %c0_9 = arith.constant 0 : index
    %c0_10 = arith.constant 0 : index
    %12 = vector.load %arg4[%c0_9, %c0_10] : memref<128x128xbf16, #tpu.memory_space<vmem>>, vector<128x128xbf16>
    %cst_11 = arith.constant dense<0.000000e+00> : vector<256x128xf32>
    %13 = tpu.matmul %11, %12, %cst_11 {dimension_numbers = #tpu.dot_dimension_numbers<[1], [0], [0], [1], [0, 0, 1, 1], [], []>} : vector<256x128xbf16>, vector<128x128xbf16>, vector<256x128xf32> -> vector<256x128xf32>
    %14 = arith.truncf %13 : vector<256x128xf32> to vector<256x128xbf16>
    %cst_12 = arith.constant dense<0.000000e+00> : vector<256x128xf32>
    %15 = tpu.matmul %0, %14, %cst_12 {dimension_numbers = #tpu.dot_dimension_numbers<[1], [0], [0], [1], [0, 0, 1, 1], [], []>} : vector<256x256xbf16>, vector<256x128xbf16>, vector<256x128xf32> -> vector<256x128xf32>
    %c0_13 = arith.constant 0 : index
    %c0_14 = arith.constant 0 : index
    %16 = vector.load %arg5[%c0_13, %c0_14] : memref<1x128xf32, #tpu.memory_space<vmem>>, vector<1x128xf32>
    %17 = vector.broadcast %16 : vector<1x128xf32> to vector<256x128xf32>
    %18 = arith.addf %15, %17 : vector<256x128xf32>
    %c0_15 = arith.constant 0 : index
    %c0_16 = arith.constant 0 : index
    %19 = vector.load %arg6[%c0_15, %c0_16] : memref<256x128xf32, #tpu.memory_space<vmem>>, vector<256x128xf32>
    tpu.vector_store %arg6[%c0_15, %c0_16], %18 {strides = array<i32>} : memref<256x128xf32, #tpu.memory_space<vmem>>, vector<256x128xf32>,
    return
  }
}

</mosaic_0001>

<bundles_post_ra>
// kernel: gcn_forward.1
= control target key start
LH: loop header
LB: loop body
LE: loop exit
PB: predicated region body
PF: predicated region fallthrough
CT: control target
= control target key end

     0   :  { %s2285_s2 = inlined_call_operand.vmem [shape: bf16[128,128], index: 2, kind: input, shape index: {}]   ;;  %s2286_s1 = inlined_call_operand.vmem [shape: bf16[256,128], index: 1, kind: input, shape index: {}]   ;;  %s2287_s0 = inlined_call_operand.vmem [shape: bf16[256,256], index: 0, kind: input, shape index: {}]   ;;  %s2288_s4 = inlined_call_operand.vmem [shape: bf16[128,128], index: 4, kind: input, shape index: {}]   ;;  %s2289_s3 = inlined_call_operand.vmem [shape: f32[1,128], index: 3, kind: input, shape index: {}]   ;;  %s2290_s5 = inlined_call_operand.vmem [shape: f32[1,128], index: 5, kind: input, shape index: {}]   ;;  %s2291_s6 = inlined_call_operand.vmem [shape: f32[256,128], index: 6, kind: output, shape index: {}]  }
   0x1   :  { %v1680_v0 = vld [vmem:[%s2285_s2] sm:$0xff]   ;;  %v1681_v1 = vld [vmem:[%s2285_s2 + $0x8] sm:$0xff]   ;;  %v1682_v2 = vld [vmem:[%s2285_s2 + $0x10] sm:$0xff]  }
   0x2   :  { %1584 = vmatprep.subr.bf16.mxu1 %v1680_v0  ;;  %v1683_v3 = vld [vmem:[%s2285_s2 + $0x18] sm:$0xff]   ;;  %v1688_v4 = vld [vmem:[%s2286_s1] sm:$0xff]   ;;  %v1685_v6 = vld [vmem:[%s2285_s2 + $0x28] sm:$0xff]  }
   0x3   :  { %1585 = vmatpush3.bf16.msra.mxu1 %v1680_v0  ;;  %1600 = vmatprep.mubr.bf16.mxu1 %v1688_v4  ;;  %v1684_v5 = vld [vmem:[%s2285_s2 + $0x20] sm:$0xff]   ;;  %v1686_v7 = vld [vmem:[%s2285_s2 + $0x30] sm:$0xff]   ;;  %v1687_v8 = vld [vmem:[%s2285_s2 + $0x38] sm:$0xff]  }
   0x4   :  { %1586 = vmatprep.subr.bf16.mxu1 %v1681_v1  ;;  %v1689_v9 = vld [vmem:[%s2286_s1 + $0x8] sm:$0xff]   ;;  %v1690_v10 = vld [vmem:[%s2286_s1 + $0x10] sm:$0xff]   ;;  %v1691_v11 = vld [vmem:[%s2286_s1 + $0x18] sm:$0xff]  }
   0x5   :  { %v1692_v12 = vld [vmem:[%s2286_s1 + $0x20] sm:$0xff]   ;;  %v1693_v13 = vld [vmem:[%s2286_s1 + $0x28] sm:$0xff]   ;;  %v1694_v14 = vld [vmem:[%s2286_s1 + $0x30] sm:$0xff]  }
   0x6   :  { %v1695_v15 = vld [vmem:[%s2286_s1 + $0x38] sm:$0xff]   ;;  %v1696_v16 = vld [vmem:[%s2286_s1 + $0x40] sm:$0xff]   ;;  %v1697_v17 = vld [vmem:[%s2286_s1 + $0x48] sm:$0xff]  }
   0x7   :  { %1587 = vmatpush3.bf16.msra.mxu1 %v1681_v1  ;;  %v1698_v18 = vld [vmem:[%s2286_s1 + $0x50] sm:$0xff]   ;;  %v1699_v19 = vld [vmem:[%s2286_s1 + $0x58] sm:$0xff]   ;;  %v1700_v20 = vld [vmem:[%s2286_s1 + $0x60] sm:$0xff]  }
   0x8   :  { %1588 = vmatprep.subr.bf16.mxu1 %v1682_v2  ;;  %v1701_v21 = vld [vmem:[%s2286_s1 + $0x68] sm:$0xff]   ;;  %v1702_v22 = vld [vmem:[%s2286_s1 + $0x70] sm:$0xff]   ;;  %v1703_v23 = vld [vmem:[%s2286_s1 + $0x78] sm:$0xff]  }
   0x9   :  { %v1870_v24 = vld [vmem:[%s2287_s0 + $0x4] ss:$8 sps:$4 sm:$0xff]  }
   0xb   :  { %1589 = vmatpush3.bf16.msra.mxu1 %v1682_v2 }
   0xc   :  { %1590 = vmatprep.subr.bf16.mxu1 %v1683_v3 }
   0xf   :  { %1591 = vmatpush3.bf16.msra.mxu1 %v1683_v3 }
  0x10   :  { %1592 = vmatprep.subr.bf16.mxu1 %v1684_v5 }
  0x13   :  { %1593 = vmatpush3.bf16.msra.mxu1 %v1684_v5 }
  0x14   :  { %1594 = vmatprep.subr.bf16.mxu1 %v1685_v6 }
  0x17   :  { %1595 = vmatpush3.bf16.msra.mxu1 %v1685_v6 }
  0x18   :  { %1596 = vmatprep.subr.bf16.mxu1 %v1686_v7 }
  0x1b   :  { %1597 = vmatpush3.bf16.msra.mxu1 %v1686_v7 }
  0x1c   :  { %1598 = vmatprep.subr.bf16.mxu1 %v1687_v8 }
  0x1f   :  { %1599 = vmatpush3.bf16.msra.mxu1 %v1687_v8 }
  0x22   :  { %1601 = vmatmul.mubr.bf16.vlgmr.msra.gmra.mrb[0].mxu1 %v1689_v9  ;;  %v1752_v9 = vld [vmem:[%s2288_s4] sm:$0xff]  }
  0x23   :  { %1604 = vmatprep.mubr.bf16.mxu1 %v1690_v10  ;;  %v1879_v10 = vld [vmem:[%s2287_s0] ss:$8 sps:$4 sm:$0xff]   ;;  %1632 = vmatprep.subr.bf16.mxu0 %v1752_v9 }
  0x24   :  { %1633 = vmatpush3.bf16.msra.mxu0 %v1752_v9 }
  0x2a   :  { %1605 = vmatmul.mubr.bf16.gmra.mrb[4].mxu1 %v1691_v11  ;;  %v1753_v11 = vld [vmem:[%s2288_s4 + $0x8] sm:$0xff]  }
  0x2b   :  { %1608 = vmatprep.mubr.bf16.mxu1 %v1692_v12  ;;  %v1887_v12 = vld [vmem:[%s2287_s0 + $0x14] ss:$8 sps:$4 sm:$0xff]   ;;  %1634 = vmatprep.subr.bf16.mxu0 %v1753_v11 }
  0x2c   :  { %1635 = vmatpush3.bf16.msra.mxu0 %v1753_v11 }
  0x32   :  { %1609 = vmatmul.mubr.bf16.gmra.mrb[8].mxu1 %v1693_v13  ;;  %v1754_v13 = vld [vmem:[%s2288_s4 + $0x10] sm:$0xff]  }
  0x33   :  { %1612 = vmatprep.mubr.bf16.mxu1 %v1694_v14  ;;  %1636 = vmatprep.subr.bf16.mxu0 %v1754_v13  ;;  %v1755_v14 = vld [vmem:[%s2288_s4 + $0x18] sm:$0xff]  }
  0x34   :  { %1637 = vmatpush3.bf16.msra.mxu0 %v1754_v13 }
  0x35   :  { %1638 = vmatprep.subr.bf16.mxu0 %v1755_v14 }
  0x38   :  { %1639 = vmatpush3.bf16.msra.mxu0 %v1755_v14 }
  0x3a   :  { %1613 = vmatmul.mubr.bf16.gmra.mrb[12].mxu1 %v1695_v15  ;;  %v1900_v15 = vld [vmem:[%s2287_s0 + $0x10] ss:$8 sps:$4 sm:$0xff]  }
  0x3b   :  { %1616 = vmatprep.mubr.bf16.mxu1 %v1696_v16  ;;  %v1905_v16 = vld [vmem:[%s2287_s0 + $0x24] ss:$8 sps:$4 sm:$0xff]  }
  0x42   :  { %1617 = vmatmul.mubr.bf16.gmra.mrb[16].mxu1 %v1697_v17  ;;  %v1912_v17 = vld [vmem:[%s2287_s0 + $0x20] ss:$8 sps:$4 sm:$0xff]  }
  0x43   :  { %1620 = vmatprep.mubr.bf16.mxu1 %v1698_v18  ;;  %v1917_v18 = vld [vmem:[%s2287_s0 + $0x34] ss:$8 sps:$4 sm:$0xff]  }
  0x4a   :  { %1621 = vmatmul.mubr.bf16.gmra.mrb[20].mxu1 %v1699_v19  ;;  %v1924_v19 = vld [vmem:[%s2287_s0 + $0x30] ss:$8 sps:$4 sm:$0xff]  }
  0x4b   :  { %1624 = vmatprep.mubr.bf16.mxu1 %v1700_v20  ;;  %v1929_v20 = vld [vmem:[%s2287_s0 + $0x44] ss:$8 sps:$4 sm:$0xff]  }
  0x52   :  { %1625 = vmatmul.mubr.bf16.gmra.mrb[24].mxu1 %v1701_v21  ;;  %v1936_v21 = vld [vmem:[%s2287_s0 + $0x40] ss:$8 sps:$4 sm:$0xff]  }
  0x53   :  { %1628 = vmatprep.mubr.bf16.mxu1 %v1702_v22  ;;  %v1941_v22 = vld [vmem:[%s2287_s0 + $0x54] ss:$8 sps:$4 sm:$0xff]  }
  0x5a   :  { %1629 = vmatmul.mubr.bf16.gmra.mrb[28].mxu1 %v1703_v23  ;;  %v1948_v23 = vld [vmem:[%s2287_s0 + $0x50] ss:$8 sps:$4 sm:$0xff]  }
  0x5b   :  { %624 = vmatprep.mubr.bf16.mxu1 %v1870_v24 }
  0xf5   :  { %v1602_v25 = vpop.f32.mrb[0].mxu1 }
  0xf6   :  { %v282_v26 = vpop.f32.mrb[1].mxu1 }
  0xf7   :  { %v1603_v27 = vpop.f32.mrb[2].mxu1 }
  0xf8   :  { %v410_v28 = vpack.c.bf16 %v1603_v27, %v1602_v25  ;;  %v285_v29 = vpop.f32.mrb[3].mxu1  ;;  %v1953_v25 = vld [vmem:[%s2287_s0 + $0x64] ss:$8 sps:$4 sm:$0xff]   ;;  %v1965_v27 = vld [vmem:[%s2287_s0 + $0x74] ss:$8 sps:$4 sm:$0xff]  }
  0xf9   :  { %v409_v30 = vpack.c.bf16 %v285_v29, %v282_v26  ;;  %v1960_v26 = vld [vmem:[%s2287_s0 + $0x60] ss:$8 sps:$4 sm:$0xff]   ;;  %v1977_v29 = vld [vmem:[%s2287_s0 + $0x84] ss:$8 sps:$4 sm:$0xff]  }
  0xfd   :  { %v1606_v31 = vpop.f32.mrb[4].mxu1 }
  0xfe   :  { %v298_v32 = vpop.f32.mrb[5].mxu1 }
  0xff   :  { %v1607_v33 = vpop.f32.mrb[6].mxu1 }
 0x100   :  { %v412_v34 = vpack.c.bf16 %v1607_v33, %v1606_v31  ;;  %v301_v35 = vpop.f32.mrb[7].mxu1  ;;  %v1989_v31 = vld [vmem:[%s2287_s0 + $0x94] ss:$8 sps:$4 sm:$0xff]   ;;  %v2001_v33 = vld [vmem:[%s2287_s0 + $0xa4] ss:$8 sps:$4 sm:$0xff]  }
 0x101   :  { %v411_v36 = vpack.c.bf16 %v301_v35, %v298_v32  ;;  %v1996_v32 = vld [vmem:[%s2287_s0 + $0x90] ss:$8 sps:$4 sm:$0xff]   ;;  %v2013_v35 = vld [vmem:[%s2287_s0 + $0xb4] ss:$8 sps:$4 sm:$0xff]  }
 0x105   :  { %v1610_v37 = vpop.f32.mrb[8].mxu1 }
 0x106   :  { %v314_v38 = vpop.f32.mrb[9].mxu1 }
 0x107   :  { %v1611_v39 = vpop.f32.mrb[10].mxu1 }
 0x108   :  { %v414_v40 = vpack.c.bf16 %v1611_v39, %v1610_v37  ;;  %v317_v41 = vpop.f32.mrb[11].mxu1  ;;  %v2025_v37 = vld [vmem:[%s2287_s0 + $0xc4] ss:$8 sps:$4 sm:$0xff]  }
 0x109   :  { %v413_v42 = vpack.c.bf16 %v317_v41, %v314_v38  ;;  %v1756_v38 = vld [vmem:[%s2288_s4 + $0x20] sm:$0xff]   ;;  %v1757_v39 = vld [vmem:[%s2288_s4 + $0x28] sm:$0xff]   ;;  %v2043_v41 = vld [vmem:[%s2287_s0 + $0xd4] ss:$8 sps:$4 sm:$0xff]  }
 0x10a   :  { %1640 = vmatprep.subr.bf16.mxu0 %v1756_v38 }
 0x10b   :  { %1641 = vmatpush3.bf16.msra.mxu0 %v1756_v38 }
 0x10c   :  { %1642 = vmatprep.subr.bf16.mxu0 %v1757_v39 }
 0x10d   :  { %v1614_v43 = vpop.f32.mrb[12].mxu1 }
 0x10e   :  { %v330_v44 = vpop.f32.mrb[13].mxu1 }
 0x10f   :  { %v1615_v45 = vpop.f32.mrb[14].mxu1  ;;  %1643 = vmatpush3.bf16.msra.mxu0 %v1757_v39 }
 0x110   :  { %v416_v46 = vpack.c.bf16 %v1615_v45, %v1614_v43  ;;  %v333_v47 = vpop.f32.mrb[15].mxu1  ;;  %v1759_v43 = vld [vmem:[%s2288_s4 + $0x38] sm:$0xff]   ;;  %v2061_v45 = vld [vmem:[%s2287_s0 + $0xe4] ss:$8 sps:$4 sm:$0xff]  }
 0x111   :  { %v415_v48 = vpack.c.bf16 %v333_v47, %v330_v44  ;;  %v2056_v44 = vld [vmem:[%s2287_s0 + $0xd0] ss:$8 sps:$4 sm:$0xff]   ;;  %v2073_v47 = vld [vmem:[%s2287_s0 + $0xf4] ss:$8 sps:$4 sm:$0xff]  }
 0x115   :  { %v1618_v49 = vpop.f32.mrb[16].mxu1 }
 0x116   :  { %v346_v50 = vpop.f32.mrb[17].mxu1 }
 0x117   :  { %v1619_v51 = vpop.f32.mrb[18].mxu1 }
 0x118   :  { %v418_v52 = vpack.c.bf16 %v1619_v51, %v1618_v49  ;;  %v349_v53 = vpop.f32.mrb[19].mxu1  ;;  %v2086_v51 = vld [vmem:[%s2289_s3] ss:$0 sm:$0xff] }
 0x119   :  { %v417_v54 = vpack.c.bf16 %v349_v53, %v346_v50 }
 0x11b   :  { %1336 = vmatprep.subr.bf16.mxu1 %v417_v54 }
 0x11c   :  { %1337 = vmatpush3.bf16.msra.mxu1 %v409_v30  ;;  %v1984_v30 = vld [vmem:[%s2287_s0 + $0x80] ss:$8 sps:$4 sm:$0xff]  }
 0x11d   :  { %v1622_v55 = vpop.f32.mrb[20].mxu1  ;;  %1338 = vmatprep.subr.bf16.mxu1 %v418_v52 }
 0x11e   :  { %v362_v56 = vpop.f32.mrb[21].mxu1 }
 0x11f   :  { %v1623_v57 = vpop.f32.mrb[22].mxu1 }
 0x120   :  { %v420_v58 = vpack.c.bf16 %v1623_v57, %v1622_v55  ;;  %v365_v59 = vpop.f32.mrb[23].mxu1  ;;  %1339 = vmatpush3.bf16.msra.mxu1 %v410_v28  ;;  %v1972_v28 = vld [vmem:[%s2287_s0 + $0x70] ss:$8 sps:$4 sm:$0xff]  }
 0x121   :  { %v419_v60 = vpack.c.bf16 %v365_v59, %v362_v56 }
 0x123   :  { %1340 = vmatprep.subr.bf16.mxu1 %v419_v60 }
 0x124   :  { %1341 = vmatpush3.bf16.msra.mxu1 %v411_v36  ;;  %v2020_v36 = vld [vmem:[%s2287_s0 + $0xb0] ss:$8 sps:$4 sm:$0xff]  }
 0x125   :  { %v1626_v61 = vpop.f32.mrb[24].mxu1  ;;  %1342 = vmatprep.subr.bf16.mxu1 %v420_v58 }
 0x126   :  { %v378_v62 = vpop.f32.mrb[25].mxu1 }
 0x127   :  { %v1627_v63 = vpop.f32.mrb[26].mxu1 }
 0x128   :  { %v422_v0 = vpack.c.bf16 %v1627_v63, %v1626_v61  ;;  %v381_v1 = vpop.f32.mrb[27].mxu1  ;;  %1343 = vmatpush3.bf16.msra.mxu1 %v412_v34  ;;  %v2008_v34 = vld [vmem:[%s2287_s0 + $0xa0] ss:$8 sps:$4 sm:$0xff]  }
 0x129   :  { %v421_v2 = vpack.c.bf16 %v381_v1, %v378_v62 }
 0x12b   :  { %1344 = vmatprep.subr.bf16.mxu1 %v421_v2 }
 0x12c   :  { %1345 = vmatpush3.bf16.msra.mxu1 %v413_v42  ;;  %v1758_v42 = vld [vmem:[%s2288_s4 + $0x30] sm:$0xff]  }
 0x12d   :  { %v1630_v3 = vpop.f32.mrb[28].mxu1  ;;  %1346 = vmatprep.subr.bf16.mxu1 %v422_v0  ;;  %1644 = vmatprep.subr.bf16.mxu0 %v1758_v42 }
 0x12e   :  { %v394_v4 = vpop.f32.mrb[29].mxu1  ;;  %1645 = vmatpush3.bf16.msra.mxu0 %v1758_v42 }
 0x12f   :  { %v1631_v5 = vpop.f32.mrb[30].mxu1  ;;  %1646 = vmatprep.subr.bf16.mxu0 %v1759_v43 }
 0x130   :  { %v424_v6 = vpack.c.bf16 %v1631_v5, %v1630_v3  ;;  %v397_v7 = vpop.f32.mrb[31].mxu1  ;;  %1347 = vmatpush3.bf16.msra.mxu1 %v414_v40  ;;  %v2038_v40 = vld [vmem:[%s2287_s0 + $0xc0] ss:$8 sps:$4 sm:$0xff]  }
 0x131   :  { %v423_v8 = vpack.c.bf16 %v397_v7, %v394_v4 }
 0x132   :  { %1647 = vmatpush3.bf16.msra.mxu0 %v1759_v43 }
 0x133   :  { %1348 = vmatprep.subr.bf16.mxu1 %v423_v8 }
 0x134   :  { %1349 = vmatpush3.bf16.msra.mxu1 %v415_v48  ;;  %v2080_v48 = vld [vmem:[%s2287_s0 + $0xf0] ss:$8 sps:$4 sm:$0xff]  }
 0x135   :  { %1350 = vmatprep.subr.bf16.mxu1 %v424_v6 }
 0x138   :  { %1351 = vmatpush3.bf16.msra.mxu1 %v416_v46  ;;  %v2068_v46 = vld [vmem:[%s2287_s0 + $0xe0] ss:$8 sps:$4 sm:$0xff]  }
 0x13b   :  { %625 = vmatmul.mubr.bf16.vlgmr.msra.gmra.mrb[32].mxu1 %v1879_v10 }
 0x13c   :  { %632 = vmatprep.mubr.bf16.mxu1 %v1887_v12 }
 0x143   :  { %633 = vmatmul.mubr.bf16.gmra.mrb[36].mxu1 %v1900_v15 }
 0x144   :  { %640 = vmatprep.mubr.bf16.mxu1 %v1905_v16 }
 0x14b   :  { %641 = vmatmul.mubr.bf16.gmra.mrb[40].mxu1 %v1912_v17 }
 0x14c   :  { %648 = vmatprep.mubr.bf16.mxu1 %v1917_v18 }
 0x153   :  { %649 = vmatmul.mubr.bf16.gmra.mrb[44].mxu1 %v1924_v19 }
 0x154   :  { %656 = vmatprep.mubr.bf16.mxu1 %v1929_v20 }
 0x15b   :  { %657 = vmatmul.mubr.bf16.gmra.mrb[48].mxu1 %v1936_v21 }
 0x15c   :  { %664 = vmatprep.mubr.bf16.mxu1 %v1941_v22 }
 0x163   :  { %665 = vmatmul.mubr.bf16.gmra.mrb[52].mxu1 %v1948_v23 }
 0x164   :  { %672 = vmatprep.mubr.bf16.mxu1 %v1953_v25 }
 0x16b   :  { %673 = vmatmul.mubr.bf16.gmra.mrb[56].mxu1 %v1960_v26 }
 0x16c   :  { %680 = vmatprep.mubr.bf16.mxu1 %v1965_v27 }
 0x173   :  { %681 = vmatmul.mubr.bf16.gmra.mrb[60].mxu1 %v1972_v28 }
 0x174   :  { %688 = vmatprep.mubr.bf16.mxu1 %v1977_v29 }
 0x17b   :  { %689 = vmatmul.mubr.bf16.gmra.mrb[64].mxu1 %v1984_v30 }
 0x17c   :  { %696 = vmatprep.mubr.bf16.mxu1 %v1989_v31 }
 0x183   :  { %697 = vmatmul.mubr.bf16.gmra.mrb[68].mxu1 %v1996_v32 }
 0x184   :  { %704 = vmatprep.mubr.bf16.mxu1 %v2001_v33 }
 0x18b   :  { %705 = vmatmul.mubr.bf16.gmra.mrb[72].mxu1 %v2008_v34 }
 0x18c   :  { %712 = vmatprep.mubr.bf16.mxu1 %v2013_v35 }
 0x193   :  { %713 = vmatmul.mubr.bf16.gmra.mrb[76].mxu1 %v2020_v36 }
 0x194   :  { %720 = vmatprep.mubr.bf16.mxu1 %v2025_v37 }
 0x19b   :  { %721 = vmatmul.mubr.bf16.gmra.mrb[80].mxu1 %v2038_v40 }
 0x19c   :  { %728 = vmatprep.mubr.bf16.mxu1 %v2043_v41 }
 0x1a3   :  { %729 = vmatmul.mubr.bf16.gmra.mrb[84].mxu1 %v2056_v44 }
 0x1a4   :  { %736 = vmatprep.mubr.bf16.mxu1 %v2061_v45 }
 0x1ab   :  { %737 = vmatmul.mubr.bf16.gmra.mrb[88].mxu1 %v2068_v46 }
 0x1ac   :  { %744 = vmatprep.mubr.bf16.mxu1 %v2073_v47 }
 0x1b3   :  { %745 = vmatmul.mubr.bf16.gmra.mrb[92].mxu1 %v2080_v48 }
 0x20e   :  { %v1352_v49 = vpop.f32.mrb[32].mxu1 }
 0x20f   :  { %v1353_v50 = vpop.f32.mrb[33].mxu1 }
 0x210   :  { %v1354_v52 = vadd.f32 %v1353_v50, %v1352_v49  ;;  %v1355_v53 = vpop.f32.mrb[34].mxu1 }
 0x211   :  { %v1356_v54 = vpop.f32.mrb[35].mxu1 }
 0x212   :  { %v1357_v55 = vadd.f32 %v1356_v54, %v1355_v53  ;;  %v627_v56 = vadd.f32 %v1354_v52, %v2086_v51 }
 0x214   :  { %v630_v57 = vadd.f32 %v1357_v55, %v2086_v51  ;;  %v753_v59 = vmax.f32 %v627_v56, 0.0 }
 0x216   :  { %v1358_v58 = vpop.f32.mrb[36].mxu1  ;;  %v754_v60 = vmax.f32 %v630_v57, 0.0 }
 0x217   :  { %v1359_v61 = vpop.f32.mrb[37].mxu1 }
 0x218   :  { %v1360_v62 = vadd.f32 %v1359_v61, %v1358_v58  ;;  %v1361_v63 = vpop.f32.mrb[38].mxu1  ;;  %v785_v0 = vpack.c.bf16 %v754_v60, %v753_v59 }
 0x219   :  { %v1362_v1 = vpop.f32.mrb[39].mxu1 }
 0x21a   :  { %v635_v2 = vadd.f32 %v1360_v62, %v2086_v51  ;;  %v1363_v3 = vadd.f32 %v1362_v1, %v1361_v63  ;;  %1648 = vmatprep.mubr.bf16.mxu0 %v785_v0 }
 0x21c   :  { %v638_v4 = vadd.f32 %v1363_v3, %v2086_v51  ;;  %v755_v5 = vmax.f32 %v635_v2, 0.0 }
 0x21e   :  { %v756_v6 = vmax.f32 %v638_v4, 0.0  ;;  %v1364_v7 = vpop.f32.mrb[40].mxu1 }
 0x21f   :  { %v1365_v8 = vpop.f32.mrb[41].mxu1 }
 0x220   :  { %v1366_v9 = vadd.f32 %v1365_v8, %v1364_v7  ;;  %v786_v11 = vpack.c.bf16 %v756_v6, %v755_v5  ;;  %v1367_v13 = vpop.f32.mrb[42].mxu1 }
 0x221   :  { %v1368_v14 = vpop.f32.mrb[43].mxu1 }
 0x222   :  { %v643_v38 = vadd.f32 %v1366_v9, %v2086_v51  ;;  %1649 = vmatmul.mubr.bf16.vlgmr.msra.gmra.mrb[0].mxu0 %v786_v11  ;;  %v1369_v39 = vadd.f32 %v1368_v14, %v1367_v13 }
 0x224   :  { %v646_v42 = vadd.f32 %v1369_v39, %v2086_v51  ;;  %v757_v43 = vmax.f32 %v643_v38, 0.0 }
 0x226   :  { %v758_v49 = vmax.f32 %v646_v42, 0.0  ;;  %v1370_v50 = vpop.f32.mrb[44].mxu1 }
 0x227   :  { %v1371_v52 = vpop.f32.mrb[45].mxu1 }
 0x228   :  { %v1372_v53 = vadd.f32 %v1371_v52, %v1370_v50  ;;  %v1373_v54 = vpop.f32.mrb[46].mxu1  ;;  %v787_v55 = vpack.c.bf16 %v758_v49, %v757_v43 }
 0x229   :  { %v1374_v56 = vpop.f32.mrb[47].mxu1 }
 0x22a   :  { %v651_v57 = vadd.f32 %v1372_v53, %v2086_v51  ;;  %v1375_v58 = vadd.f32 %v1374_v56, %v1373_v54  ;;  %1652 = vmatprep.mubr.bf16.mxu0 %v787_v55 }
 0x22c   :  { %v654_v59 = vadd.f32 %v1375_v58, %v2086_v51  ;;  %v759_v60 = vmax.f32 %v651_v57, 0.0 }
 0x22e   :  { %v760_v61 = vmax.f32 %v654_v59, 0.0  ;;  %v1376_v62 = vpop.f32.mrb[48].mxu1 }
 0x22f   :  { %v1377_v63 = vpop.f32.mrb[49].mxu1 }
 0x230   :  { %v1378_v0 = vadd.f32 %v1377_v63, %v1376_v62  ;;  %v1379_v1 = vpop.f32.mrb[50].mxu1  ;;  %v788_v2 = vpack.c.bf16 %v760_v61, %v759_v60 }
 0x231   :  { %v1380_v3 = vpop.f32.mrb[51].mxu1 }
 0x232   :  { %v659_v4 = vadd.f32 %v1378_v0, %v2086_v51  ;;  %1653 = vmatmul.mubr.bf16.gmra.mrb[4].mxu0 %v788_v2  ;;  %v1381_v5 = vadd.f32 %v1380_v3, %v1379_v1 }
 0x234   :  { %v662_v6 = vadd.f32 %v1381_v5, %v2086_v51  ;;  %v761_v7 = vmax.f32 %v659_v4, 0.0 }
 0x236   :  { %v762_v8 = vmax.f32 %v662_v6, 0.0  ;;  %v1382_v9 = vpop.f32.mrb[52].mxu1 }
 0x237   :  { %v1383_v11 = vpop.f32.mrb[53].mxu1 }
 0x238   :  { %v1384_v13 = vadd.f32 %v1383_v11, %v1382_v9  ;;  %v1385_v14 = vpop.f32.mrb[54].mxu1  ;;  %v789_v38 = vpack.c.bf16 %v762_v8, %v761_v7 }
 0x239   :  { %v1386_v39 = vpop.f32.mrb[55].mxu1 }
 0x23a   :  { %v667_v42 = vadd.f32 %v1384_v13, %v2086_v51  ;;  %v1387_v43 = vadd.f32 %v1386_v39, %v1385_v14  ;;  %1656 = vmatprep.mubr.bf16.mxu0 %v789_v38 }
 0x23c   :  { %v670_v49 = vadd.f32 %v1387_v43, %v2086_v51  ;;  %v763_v50 = vmax.f32 %v667_v42, 0.0 }
 0x23e   :  { %v764_v52 = vmax.f32 %v670_v49, 0.0  ;;  %v1388_v53 = vpop.f32.mrb[56].mxu1 }
 0x23f   :  { %v1389_v54 = vpop.f32.mrb[57].mxu1 }
 0x240   :  { %v1390_v55 = vadd.f32 %v1389_v54, %v1388_v53  ;;  %v1391_v56 = vpop.f32.mrb[58].mxu1  ;;  %v790_v57 = vpack.c.bf16 %v764_v52, %v763_v50 }
 0x241   :  { %v1392_v58 = vpop.f32.mrb[59].mxu1 }
 0x242   :  { %v675_v59 = vadd.f32 %v1390_v55, %v2086_v51  ;;  %v1393_v60 = vadd.f32 %v1392_v58, %v1391_v56  ;;  %1657 = vmatmul.mubr.bf16.gmra.mrb[8].mxu0 %v790_v57 }
 0x244   :  { %v678_v61 = vadd.f32 %v1393_v60, %v2086_v51  ;;  %v765_v62 = vmax.f32 %v675_v59, 0.0 }
 0x246   :  { %v766_v63 = vmax.f32 %v678_v61, 0.0  ;;  %v1394_v0 = vpop.f32.mrb[60].mxu1 }
 0x247   :  { %v1395_v1 = vpop.f32.mrb[61].mxu1 }
 0x248   :  { %v1396_v2 = vadd.f32 %v1395_v1, %v1394_v0  ;;  %v1397_v3 = vpop.f32.mrb[62].mxu1  ;;  %v791_v4 = vpack.c.bf16 %v766_v63, %v765_v62 }
 0x249   :  { %v1398_v5 = vpop.f32.mrb[63].mxu1 }
 0x24a   :  { %v683_v6 = vadd.f32 %v1396_v2, %v2086_v51  ;;  %v1399_v7 = vadd.f32 %v1398_v5, %v1397_v3  ;;  %1660 = vmatprep.mubr.bf16.mxu0 %v791_v4 }
 0x24c   :  { %v686_v8 = vadd.f32 %v1399_v7, %v2086_v51  ;;  %v767_v9 = vmax.f32 %v683_v6, 0.0 }
 0x24e   :  { %v768_v11 = vmax.f32 %v686_v8, 0.0  ;;  %v1400_v13 = vpop.f32.mrb[64].mxu1 }
 0x24f   :  { %v1401_v14 = vpop.f32.mrb[65].mxu1 }
 0x250   :  { %v1402_v38 = vadd.f32 %v1401_v14, %v1400_v13  ;;  %v1403_v39 = vpop.f32.mrb[66].mxu1  ;;  %v792_v42 = vpack.c.bf16 %v768_v11, %v767_v9 }
 0x251   :  { %v1404_v43 = vpop.f32.mrb[67].mxu1 }
 0x252   :  { %v691_v49 = vadd.f32 %v1402_v38, %v2086_v51  ;;  %v1405_v50 = vadd.f32 %v1404_v43, %v1403_v39  ;;  %1661 = vmatmul.mubr.bf16.gmra.mrb[12].mxu0 %v792_v42 }
 0x254   :  { %v694_v52 = vadd.f32 %v1405_v50, %v2086_v51  ;;  %v769_v53 = vmax.f32 %v691_v49, 0.0 }
 0x256   :  { %v770_v54 = vmax.f32 %v694_v52, 0.0  ;;  %v1406_v55 = vpop.f32.mrb[68].mxu1 }
 0x257   :  { %v1407_v56 = vpop.f32.mrb[69].mxu1 }
 0x258   :  { %v1408_v57 = vadd.f32 %v1407_v56, %v1406_v55  ;;  %v1409_v58 = vpop.f32.mrb[70].mxu1  ;;  %v793_v59 = vpack.c.bf16 %v770_v54, %v769_v53 }
 0x259   :  { %v1410_v60 = vpop.f32.mrb[71].mxu1 }
 0x25a   :  { %v699_v61 = vadd.f32 %v1408_v57, %v2086_v51  ;;  %v1411_v62 = vadd.f32 %v1410_v60, %v1409_v58  ;;  %1664 = vmatprep.mubr.bf16.mxu0 %v793_v59 }
 0x25c   :  { %v702_v63 = vadd.f32 %v1411_v62, %v2086_v51  ;;  %v771_v0 = vmax.f32 %v699_v61, 0.0 }
 0x25e   :  { %v772_v1 = vmax.f32 %v702_v63, 0.0  ;;  %v1412_v2 = vpop.f32.mrb[72].mxu1 }
 0x25f   :  { %v1413_v3 = vpop.f32.mrb[73].mxu1 }
 0x260   :  { %v794_v4 = vpack.c.bf16 %v772_v1, %v771_v0  ;;  %v1414_v5 = vadd.f32 %v1413_v3, %v1412_v2  ;;  %v1415_v6 = vpop.f32.mrb[74].mxu1 }
 0x261   :  { %v1416_v7 = vpop.f32.mrb[75].mxu1 }
 0x262   :  { %1665 = vmatmul.mubr.bf16.gmra.mrb[16].mxu0 %v794_v4  ;;  %v707_v8 = vadd.f32 %v1414_v5, %v2086_v51  ;;  %v1417_v9 = vadd.f32 %v1416_v7, %v1415_v6 }
 0x264   :  { %v710_v11 = vadd.f32 %v1417_v9, %v2086_v51  ;;  %v773_v13 = vmax.f32 %v707_v8, 0.0 }
 0x266   :  { %v774_v14 = vmax.f32 %v710_v11, 0.0  ;;  %v1418_v38 = vpop.f32.mrb[76].mxu1 }
 0x267   :  { %v1419_v39 = vpop.f32.mrb[77].mxu1 }
 0x268   :  { %v1420_v42 = vadd.f32 %v1419_v39, %v1418_v38  ;;  %v1421_v43 = vpop.f32.mrb[78].mxu1  ;;  %v795_v49 = vpack.c.bf16 %v774_v14, %v773_v13 }
 0x269   :  { %v1422_v50 = vpop.f32.mrb[79].mxu1 }
 0x26a   :  { %v715_v52 = vadd.f32 %v1420_v42, %v2086_v51  ;;  %v1423_v53 = vadd.f32 %v1422_v50, %v1421_v43  ;;  %1668 = vmatprep.mubr.bf16.mxu0 %v795_v49 }
 0x26c   :  { %v718_v54 = vadd.f32 %v1423_v53, %v2086_v51  ;;  %v775_v55 = vmax.f32 %v715_v52, 0.0 }
 0x26e   :  { %v776_v56 = vmax.f32 %v718_v54, 0.0  ;;  %v1424_v57 = vpop.f32.mrb[80].mxu1 }
 0x26f   :  { %v1425_v58 = vpop.f32.mrb[81].mxu1 }
 0x270   :  { %v796_v59 = vpack.c.bf16 %v776_v56, %v775_v55  ;;  %v1426_v60 = vadd.f32 %v1425_v58, %v1424_v57  ;;  %v1427_v61 = vpop.f32.mrb[82].mxu1 }
 0x271   :  { %v1428_v62 = vpop.f32.mrb[83].mxu1 }
 0x272   :  { %1669 = vmatmul.mubr.bf16.gmra.mrb[20].mxu0 %v796_v59  ;;  %v723_v63 = vadd.f32 %v1426_v60, %v2086_v51  ;;  %v1429_v0 = vadd.f32 %v1428_v62, %v1427_v61 }
 0x274   :  { %v726_v1 = vadd.f32 %v1429_v0, %v2086_v51  ;;  %v777_v2 = vmax.f32 %v723_v63, 0.0 }
 0x276   :  { %v778_v3 = vmax.f32 %v726_v1, 0.0  ;;  %v1430_v4 = vpop.f32.mrb[84].mxu1 }
 0x277   :  { %v1431_v5 = vpop.f32.mrb[85].mxu1 }
 0x278   :  { %v1432_v6 = vadd.f32 %v1431_v5, %v1430_v4  ;;  %v1433_v7 = vpop.f32.mrb[86].mxu1  ;;  %v797_v8 = vpack.c.bf16 %v778_v3, %v777_v2 }
 0x279   :  { %v1434_v9 = vpop.f32.mrb[87].mxu1 }
 0x27a   :  { %v731_v11 = vadd.f32 %v1432_v6, %v2086_v51  ;;  %v1435_v13 = vadd.f32 %v1434_v9, %v1433_v7  ;;  %1672 = vmatprep.mubr.bf16.mxu0 %v797_v8 }
 0x27c   :  { %v734_v14 = vadd.f32 %v1435_v13, %v2086_v51  ;;  %v779_v38 = vmax.f32 %v731_v11, 0.0 }
 0x27e   :  { %v780_v39 = vmax.f32 %v734_v14, 0.0  ;;  %v1436_v42 = vpop.f32.mrb[88].mxu1 }
 0x27f   :  { %v1437_v43 = vpop.f32.mrb[89].mxu1 }
 0x280   :  { %v798_v49 = vpack.c.bf16 %v780_v39, %v779_v38  ;;  %v1438_v50 = vadd.f32 %v1437_v43, %v1436_v42  ;;  %v1439_v52 = vpop.f32.mrb[90].mxu1 }
 0x281   :  { %v1440_v53 = vpop.f32.mrb[91].mxu1 }
 0x282   :  { %1673 = vmatmul.mubr.bf16.gmra.mrb[24].mxu0 %v798_v49  ;;  %v739_v54 = vadd.f32 %v1438_v50, %v2086_v51  ;;  %v1441_v55 = vadd.f32 %v1440_v53, %v1439_v52 }
 0x284   :  { %v742_v56 = vadd.f32 %v1441_v55, %v2086_v51  ;;  %v781_v57 = vmax.f32 %v739_v54, 0.0 }
 0x286   :  { %v782_v58 = vmax.f32 %v742_v56, 0.0  ;;  %v1442_v59 = vpop.f32.mrb[92].mxu1 }
 0x287   :  { %v1443_v60 = vpop.f32.mrb[93].mxu1 }
 0x288   :  { %v1444_v61 = vadd.f32 %v1443_v60, %v1442_v59  ;;  %v1445_v62 = vpop.f32.mrb[94].mxu1  ;;  %v799_v63 = vpack.c.bf16 %v782_v58, %v781_v57 }
 0x289   :  { %v1446_v0 = vpop.f32.mrb[95].mxu1 }
 0x28a   :  { %v747_v1 = vadd.f32 %v1444_v61, %v2086_v51  ;;  %v1447_v2 = vadd.f32 %v1446_v0, %v1445_v62  ;;  %1676 = vmatprep.mubr.bf16.mxu0 %v799_v63 }
 0x28c   :  { %v750_v3 = vadd.f32 %v1447_v2, %v2086_v51  ;;  %v783_v4 = vmax.f32 %v747_v1, 0.0 }
 0x28e   :  { %v784_v5 = vmax.f32 %v750_v3, 0.0 }
 0x290   :  { %v800_v6 = vpack.c.bf16 %v784_v5, %v783_v4 }
 0x292   :  { %1677 = vmatmul.mubr.bf16.gmra.mrb[28].mxu0 %v800_v6 }
 0x293   :  { %1081 = vmatprep.mubr.bf16.mxu0 %v1870_v24 }
 0x2f5   :  { %v1650_v7 = vpop.f32.mrb[0].mxu0 }
 0x2f6   :  { %v899_v8 = vpop.f32.mrb[1].mxu0 }
 0x2f7   :  { %v1651_v9 = vpop.f32.mrb[2].mxu0 }
 0x2f8   :  { %v1027_v11 = vpack.c.bf16 %v1651_v9, %v1650_v7  ;;  %v902_v13 = vpop.f32.mrb[3].mxu0 }
 0x2f9   :  { %v1026_v14 = vpack.c.bf16 %v902_v13, %v899_v8 }
 0x305   :  { %v1654_v38 = vpop.f32.mrb[4].mxu0 }
 0x306   :  { %v915_v39 = vpop.f32.mrb[5].mxu0 }
 0x307   :  { %v1655_v42 = vpop.f32.mrb[6].mxu0 }
 0x308   :  { %v1029_v43 = vpack.c.bf16 %v1655_v42, %v1654_v38  ;;  %v918_v49 = vpop.f32.mrb[7].mxu0 }
 0x309   :  { %v1028_v50 = vpack.c.bf16 %v918_v49, %v915_v39 }
 0x315   :  { %v1658_v52 = vpop.f32.mrb[8].mxu0 }
 0x316   :  { %v931_v51 = vpop.f32.mrb[9].mxu0 }
 0x317   :  { %v1659_v53 = vpop.f32.mrb[10].mxu0 }
 0x318   :  { %v1031_v54 = vpack.c.bf16 %v1659_v53, %v1658_v52  ;;  %v934_v55 = vpop.f32.mrb[11].mxu0 }
 0x319   :  { %v1030_v56 = vpack.c.bf16 %v934_v55, %v931_v51 }
 0x325   :  { %v1662_v57 = vpop.f32.mrb[12].mxu0 }
 0x326   :  { %v947_v24 = vpop.f32.mrb[13].mxu0 }
 0x327   :  { %v1663_v58 = vpop.f32.mrb[14].mxu0 }
 0x328   :  { %v1033_v59 = vpack.c.bf16 %v1663_v58, %v1662_v57  ;;  %v950_v60 = vpop.f32.mrb[15].mxu0 }
 0x329   :  { %v1032_v61 = vpack.c.bf16 %v950_v60, %v947_v24 }
 0x335   :  { %v1666_v62 = vpop.f32.mrb[16].mxu0 }
 0x336   :  { %v963_v63 = vpop.f32.mrb[17].mxu0 }
 0x337   :  { %v1667_v0 = vpop.f32.mrb[18].mxu0 }
 0x338   :  { %v1035_v1 = vpack.c.bf16 %v1667_v0, %v1666_v62  ;;  %v966_v2 = vpop.f32.mrb[19].mxu0 }
 0x339   :  { %v1034_v3 = vpack.c.bf16 %v966_v2, %v963_v63 }
 0x33b   :  { %1472 = vmatprep.subr.bf16.mxu0 %v1034_v3 }
 0x33c   :  { %1473 = vmatpush3.bf16.msra.mxu0 %v1026_v14 }
 0x33d   :  { %1474 = vmatprep.subr.bf16.mxu0 %v1035_v1 }
 0x340   :  { %1475 = vmatpush3.bf16.msra.mxu0 %v1027_v11 }
 0x345   :  { %v1670_v4 = vpop.f32.mrb[20].mxu0 }
 0x346   :  { %v979_v5 = vpop.f32.mrb[21].mxu0 }
 0x347   :  { %v1671_v6 = vpop.f32.mrb[22].mxu0 }
 0x348   :  { %v1037_v7 = vpack.c.bf16 %v1671_v6, %v1670_v4  ;;  %v982_v8 = vpop.f32.mrb[23].mxu0 }
 0x349   :  { %v1036_v9 = vpack.c.bf16 %v982_v8, %v979_v5 }
 0x34b   :  { %1476 = vmatprep.subr.bf16.mxu0 %v1036_v9 }
 0x34c   :  { %1477 = vmatpush3.bf16.msra.mxu0 %v1028_v50 }
 0x34d   :  { %1478 = vmatprep.subr.bf16.mxu0 %v1037_v7 }
 0x350   :  { %1479 = vmatpush3.bf16.msra.mxu0 %v1029_v43 }
 0x355   :  { %v1674_v13 = vpop.f32.mrb[24].mxu0 }
 0x356   :  { %v995_v38 = vpop.f32.mrb[25].mxu0 }
 0x357   :  { %v1675_v39 = vpop.f32.mrb[26].mxu0 }
 0x358   :  { %v1039_v42 = vpack.c.bf16 %v1675_v39, %v1674_v13  ;;  %v998_v49 = vpop.f32.mrb[27].mxu0 }
 0x359   :  { %v1038_v52 = vpack.c.bf16 %v998_v49, %v995_v38 }
 0x35b   :  { %1480 = vmatprep.subr.bf16.mxu0 %v1038_v52 }
 0x35c   :  { %1481 = vmatpush3.bf16.msra.mxu0 %v1030_v56 }
 0x35d   :  { %1482 = vmatprep.subr.bf16.mxu0 %v1039_v42 }
 0x360   :  { %1483 = vmatpush3.bf16.msra.mxu0 %v1031_v54 }
 0x365   :  { %v1678_v11 = vpop.f32.mrb[28].mxu0 }
 0x366   :  { %v1011_v14 = vpop.f32.mrb[29].mxu0 }
 0x367   :  { %v1679_v51 = vpop.f32.mrb[30].mxu0 }
 0x368   :  { %v1041_v53 = vpack.c.bf16 %v1679_v51, %v1678_v11  ;;  %v1014_v55 = vpop.f32.mrb[31].mxu0 }
 0x369   :  { %v1040_v57 = vpack.c.bf16 %v1014_v55, %v1011_v14 }
 0x36b   :  { %1484 = vmatprep.subr.bf16.mxu0 %v1040_v57 }
 0x36c   :  { %1485 = vmatpush3.bf16.msra.mxu0 %v1032_v61 }
 0x36d   :  { %1486 = vmatprep.subr.bf16.mxu0 %v1041_v53 }
 0x370   :  { %1487 = vmatpush3.bf16.msra.mxu0 %v1033_v59 }
 0x373   :  { %1082 = vmatmul.mubr.bf16.vlgmr.msra.gmra.mrb[32].mxu0 %v1879_v10 }
 0x374   :  { %1089 = vmatprep.mubr.bf16.mxu0 %v1887_v12  ;;  %v2155_v12 = vld [vmem:[%s2290_s5] ss:$0 sm:$0xff] }
 0x37b   :  { %1090 = vmatmul.mubr.bf16.gmra.mrb[36].mxu0 %v1900_v15 }
 0x37c   :  { %1097 = vmatprep.mubr.bf16.mxu0 %v1905_v16 }
 0x383   :  { %1098 = vmatmul.mubr.bf16.gmra.mrb[40].mxu0 %v1912_v17 }
 0x384   :  { %1105 = vmatprep.mubr.bf16.mxu0 %v1917_v18 }
 0x38b   :  { %1106 = vmatmul.mubr.bf16.gmra.mrb[44].mxu0 %v1924_v19 }
 0x38c   :  { %1113 = vmatprep.mubr.bf16.mxu0 %v1929_v20 }
 0x393   :  { %1114 = vmatmul.mubr.bf16.gmra.mrb[48].mxu0 %v1936_v21 }
 0x394   :  { %1121 = vmatprep.mubr.bf16.mxu0 %v1941_v22 }
 0x39b   :  { %1122 = vmatmul.mubr.bf16.gmra.mrb[52].mxu0 %v1948_v23 }
 0x39c   :  { %1129 = vmatprep.mubr.bf16.mxu0 %v1953_v25 }
 0x3a3   :  { %1130 = vmatmul.mubr.bf16.gmra.mrb[56].mxu0 %v1960_v26 }
 0x3a4   :  { %1137 = vmatprep.mubr.bf16.mxu0 %v1965_v27 }
 0x3ab   :  { %1138 = vmatmul.mubr.bf16.gmra.mrb[60].mxu0 %v1972_v28 }
 0x3ac   :  { %1145 = vmatprep.mubr.bf16.mxu0 %v1977_v29 }
 0x3b3   :  { %1146 = vmatmul.mubr.bf16.gmra.mrb[64].mxu0 %v1984_v30 }
 0x3b4   :  { %1153 = vmatprep.mubr.bf16.mxu0 %v1989_v31 }
 0x3bb   :  { %1154 = vmatmul.mubr.bf16.gmra.mrb[68].mxu0 %v1996_v32 }
 0x3bc   :  { %1161 = vmatprep.mubr.bf16.mxu0 %v2001_v33 }
 0x3c3   :  { %1162 = vmatmul.mubr.bf16.gmra.mrb[72].mxu0 %v2008_v34 }
 0x3c4   :  { %1169 = vmatprep.mubr.bf16.mxu0 %v2013_v35 }
 0x3cb   :  { %1170 = vmatmul.mubr.bf16.gmra.mrb[76].mxu0 %v2020_v36 }
 0x3cc   :  { %1177 = vmatprep.mubr.bf16.mxu0 %v2025_v37 }
 0x3d3   :  { %1178 = vmatmul.mubr.bf16.gmra.mrb[80].mxu0 %v2038_v40 }
 0x3d4   :  { %1185 = vmatprep.mubr.bf16.mxu0 %v2043_v41 }
 0x3db   :  { %1186 = vmatmul.mubr.bf16.gmra.mrb[84].mxu0 %v2056_v44 }
 0x3dc   :  { %1193 = vmatprep.mubr.bf16.mxu0 %v2061_v45 }
 0x3e3   :  { %1194 = vmatmul.mubr.bf16.gmra.mrb[88].mxu0 %v2068_v46 }
 0x3e4   :  { %1201 = vmatprep.mubr.bf16.mxu0 %v2073_v47 }
 0x3eb   :  { %1202 = vmatmul.mubr.bf16.gmra.mrb[92].mxu0 %v2080_v48 }
 0x446   :  { %v1488_v10 = vpop.f32.mrb[32].mxu0 }
 0x447   :  { %v1489_v15 = vpop.f32.mrb[33].mxu0 }
 0x448   :  { %v1490_v16 = vadd.f32 %v1489_v15, %v1488_v10  ;;  %v1491_v17 = vpop.f32.mrb[34].mxu0 }
 0x449   :  { %v1492_v18 = vpop.f32.mrb[35].mxu0 }
 0x44a   :  { %v1084_v19 = vadd.f32 %v1490_v16, %v2155_v12  ;;  %v1493_v20 = vadd.f32 %v1492_v18, %v1491_v17 }
 0x44c   :  { %1210 = vst [vmem:[%s2291_s6] sm:$0xff] %v1084_v19  ;;  %v1087_v21 = vadd.f32 %v1493_v20, %v2155_v12 }
 0x44e   :  { %1211 = vst [vmem:[%s2291_s6 + $0x8] sm:$0xff] %v1087_v21  ;;  %v1494_v22 = vpop.f32.mrb[36].mxu0 }
 0x44f   :  { %v1495_v23 = vpop.f32.mrb[37].mxu0 }
 0x450   :  { %v1496_v25 = vadd.f32 %v1495_v23, %v1494_v22  ;;  %v1497_v26 = vpop.f32.mrb[38].mxu0 }
 0x451   :  { %v1498_v27 = vpop.f32.mrb[39].mxu0 }
 0x452   :  { %v1092_v28 = vadd.f32 %v1496_v25, %v2155_v12  ;;  %v1499_v29 = vadd.f32 %v1498_v27, %v1497_v26 }
 0x454   :  { %1212 = vst [vmem:[%s2291_s6 + $0x10] sm:$0xff] %v1092_v28  ;;  %v1095_v30 = vadd.f32 %v1499_v29, %v2155_v12 }
 0x456   :  { %1213 = vst [vmem:[%s2291_s6 + $0x18] sm:$0xff] %v1095_v30  ;;  %v1500_v31 = vpop.f32.mrb[40].mxu0 }
 0x457   :  { %v1501_v32 = vpop.f32.mrb[41].mxu0 }
 0x458   :  { %v1502_v33 = vadd.f32 %v1501_v32, %v1500_v31  ;;  %v1503_v34 = vpop.f32.mrb[42].mxu0 }
 0x459   :  { %v1504_v35 = vpop.f32.mrb[43].mxu0 }
 0x45a   :  { %v1100_v36 = vadd.f32 %v1502_v33, %v2155_v12  ;;  %v1505_v37 = vadd.f32 %v1504_v35, %v1503_v34 }
 0x45c   :  { %1214 = vst [vmem:[%s2291_s6 + $0x20] sm:$0xff] %v1100_v36  ;;  %v1103_v40 = vadd.f32 %v1505_v37, %v2155_v12 }
 0x45e   :  { %1215 = vst [vmem:[%s2291_s6 + $0x28] sm:$0xff] %v1103_v40  ;;  %v1506_v41 = vpop.f32.mrb[44].mxu0 }
 0x45f   :  { %v1507_v44 = vpop.f32.mrb[45].mxu0 }
 0x460   :  { %v1508_v45 = vadd.f32 %v1507_v44, %v1506_v41  ;;  %v1509_v46 = vpop.f32.mrb[46].mxu0 }
 0x461   :  { %v1510_v47 = vpop.f32.mrb[47].mxu0 }
 0x462   :  { %v1108_v48 = vadd.f32 %v1508_v45, %v2155_v12  ;;  %v1511_v43 = vadd.f32 %v1510_v47, %v1509_v46 }
 0x464   :  { %1216 = vst [vmem:[%s2291_s6 + $0x30] sm:$0xff] %v1108_v48  ;;  %v1111_v50 = vadd.f32 %v1511_v43, %v2155_v12 }
 0x466   :  { %1217 = vst [vmem:[%s2291_s6 + $0x38] sm:$0xff] %v1111_v50  ;;  %v1512_v54 = vpop.f32.mrb[48].mxu0 }
 0x467   :  { %v1513_v56 = vpop.f32.mrb[49].mxu0 }
 0x468   :  { %v1514_v24 = vadd.f32 %v1513_v56, %v1512_v54  ;;  %v1515_v58 = vpop.f32.mrb[50].mxu0 }
 0x469   :  { %v1516_v59 = vpop.f32.mrb[51].mxu0 }
 0x46a   :  { %v1116_v60 = vadd.f32 %v1514_v24, %v2155_v12  ;;  %v1517_v61 = vadd.f32 %v1516_v59, %v1515_v58 }
 0x46c   :  { %1218 = vst [vmem:[%s2291_s6 + $0x40] sm:$0xff] %v1116_v60  ;;  %v1119_v62 = vadd.f32 %v1517_v61, %v2155_v12 }
 0x46e   :  { %1219 = vst [vmem:[%s2291_s6 + $0x48] sm:$0xff] %v1119_v62  ;;  %v1518_v63 = vpop.f32.mrb[52].mxu0 }
 0x46f   :  { %v1519_v0 = vpop.f32.mrb[53].mxu0 }
 0x470   :  { %v1520_v1 = vadd.f32 %v1519_v0, %v1518_v63  ;;  %v1521_v2 = vpop.f32.mrb[54].mxu0 }
 0x471   :  { %v1522_v3 = vpop.f32.mrb[55].mxu0 }
 0x472   :  { %v1124_v4 = vadd.f32 %v1520_v1, %v2155_v12  ;;  %v1523_v5 = vadd.f32 %v1522_v3, %v1521_v2 }
 0x474   :  { %1220 = vst [vmem:[%s2291_s6 + $0x50] sm:$0xff] %v1124_v4  ;;  %v1127_v6 = vadd.f32 %v1523_v5, %v2155_v12 }
 0x476   :  { %1221 = vst [vmem:[%s2291_s6 + $0x58] sm:$0xff] %v1127_v6  ;;  %v1524_v7 = vpop.f32.mrb[56].mxu0 }
 0x477   :  { %v1525_v8 = vpop.f32.mrb[57].mxu0 }
 0x478   :  { %v1526_v9 = vadd.f32 %v1525_v8, %v1524_v7  ;;  %v1527_v13 = vpop.f32.mrb[58].mxu0 }
 0x479   :  { %v1528_v38 = vpop.f32.mrb[59].mxu0 }
 0x47a   :  { %v1132_v39 = vadd.f32 %v1526_v9, %v2155_v12  ;;  %v1529_v42 = vadd.f32 %v1528_v38, %v1527_v13 }
 0x47c   :  { %1222 = vst [vmem:[%s2291_s6 + $0x60] sm:$0xff] %v1132_v39  ;;  %v1135_v49 = vadd.f32 %v1529_v42, %v2155_v12 }
 0x47e   :  { %1223 = vst [vmem:[%s2291_s6 + $0x68] sm:$0xff] %v1135_v49  ;;  %v1530_v52 = vpop.f32.mrb[60].mxu0 }
 0x47f   :  { %v1531_v11 = vpop.f32.mrb[61].mxu0 }
 0x480   :  { %v1532_v14 = vadd.f32 %v1531_v11, %v1530_v52  ;;  %v1533_v51 = vpop.f32.mrb[62].mxu0 }
 0x481   :  { %v1534_v53 = vpop.f32.mrb[63].mxu0 }
 0x482   :  { %v1140_v55 = vadd.f32 %v1532_v14, %v2155_v12  ;;  %v1535_v57 = vadd.f32 %v1534_v53, %v1533_v51 }
 0x484   :  { %1224 = vst [vmem:[%s2291_s6 + $0x70] sm:$0xff] %v1140_v55  ;;  %v1143_v10 = vadd.f32 %v1535_v57, %v2155_v12 }
 0x486   :  { %1225 = vst [vmem:[%s2291_s6 + $0x78] sm:$0xff] %v1143_v10  ;;  %v1536_v15 = vpop.f32.mrb[64].mxu0 }
 0x487   :  { %v1537_v16 = vpop.f32.mrb[65].mxu0 }
 0x488   :  { %v1538_v17 = vadd.f32 %v1537_v16, %v1536_v15  ;;  %v1539_v18 = vpop.f32.mrb[66].mxu0 }
 0x489   :  { %v1540_v19 = vpop.f32.mrb[67].mxu0 }
 0x48a   :  { %v1148_v20 = vadd.f32 %v1538_v17, %v2155_v12  ;;  %v1541_v21 = vadd.f32 %v1540_v19, %v1539_v18 }
 0x48c   :  { %1226 = vst [vmem:[%s2291_s6 + $0x80] sm:$0xff] %v1148_v20  ;;  %v1151_v22 = vadd.f32 %v1541_v21, %v2155_v12 }
 0x48e   :  { %1227 = vst [vmem:[%s2291_s6 + $0x88] sm:$0xff] %v1151_v22  ;;  %v1542_v23 = vpop.f32.mrb[68].mxu0 }
 0x48f   :  { %v1543_v25 = vpop.f32.mrb[69].mxu0 }
 0x490   :  { %v1544_v26 = vadd.f32 %v1543_v25, %v1542_v23  ;;  %v1545_v27 = vpop.f32.mrb[70].mxu0 }
 0x491   :  { %v1546_v28 = vpop.f32.mrb[71].mxu0 }
 0x492   :  { %v1156_v29 = vadd.f32 %v1544_v26, %v2155_v12  ;;  %v1547_v30 = vadd.f32 %v1546_v28, %v1545_v27 }
 0x494   :  { %1228 = vst [vmem:[%s2291_s6 + $0x90] sm:$0xff] %v1156_v29  ;;  %v1159_v31 = vadd.f32 %v1547_v30, %v2155_v12 }
 0x496   :  { %1229 = vst [vmem:[%s2291_s6 + $0x98] sm:$0xff] %v1159_v31  ;;  %v1548_v32 = vpop.f32.mrb[72].mxu0 }
 0x497   :  { %v1549_v33 = vpop.f32.mrb[73].mxu0 }
 0x498   :  { %v1550_v34 = vadd.f32 %v1549_v33, %v1548_v32  ;;  %v1551_v35 = vpop.f32.mrb[74].mxu0 }
 0x499   :  { %v1552_v36 = vpop.f32.mrb[75].mxu0 }
 0x49a   :  { %v1164_v37 = vadd.f32 %v1550_v34, %v2155_v12  ;;  %v1553_v40 = vadd.f32 %v1552_v36, %v1551_v35 }
 0x49c   :  { %1230 = vst [vmem:[%s2291_s6 + $0xa0] sm:$0xff] %v1164_v37  ;;  %v1167_v41 = vadd.f32 %v1553_v40, %v2155_v12 }
 0x49e   :  { %1231 = vst [vmem:[%s2291_s6 + $0xa8] sm:$0xff] %v1167_v41  ;;  %v1554_v44 = vpop.f32.mrb[76].mxu0 }
 0x49f   :  { %v1555_v45 = vpop.f32.mrb[77].mxu0 }
 0x4a0   :  { %v1556_v46 = vadd.f32 %v1555_v45, %v1554_v44  ;;  %v1557_v47 = vpop.f32.mrb[78].mxu0 }
 0x4a1   :  { %v1558_v48 = vpop.f32.mrb[79].mxu0 }
 0x4a2   :  { %v1172_v43 = vadd.f32 %v1556_v46, %v2155_v12  ;;  %v1559_v50 = vadd.f32 %v1558_v48, %v1557_v47 }
 0x4a4   :  { %1232 = vst [vmem:[%s2291_s6 + $0xb0] sm:$0xff] %v1172_v43  ;;  %v1175_v54 = vadd.f32 %v1559_v50, %v2155_v12 }
 0x4a6   :  { %1233 = vst [vmem:[%s2291_s6 + $0xb8] sm:$0xff] %v1175_v54  ;;  %v1560_v56 = vpop.f32.mrb[80].mxu0 }
 0x4a7   :  { %v1561_v24 = vpop.f32.mrb[81].mxu0 }
 0x4a8   :  { %v1562_v58 = vadd.f32 %v1561_v24, %v1560_v56  ;;  %v1563_v59 = vpop.f32.mrb[82].mxu0 }
 0x4a9   :  { %v1564_v60 = vpop.f32.mrb[83].mxu0 }
 0x4aa   :  { %v1180_v61 = vadd.f32 %v1562_v58, %v2155_v12  ;;  %v1565_v62 = vadd.f32 %v1564_v60, %v1563_v59 }
 0x4ac   :  { %1234 = vst [vmem:[%s2291_s6 + $0xc0] sm:$0xff] %v1180_v61  ;;  %v1183_v63 = vadd.f32 %v1565_v62, %v2155_v12 }
 0x4ae   :  { %1235 = vst [vmem:[%s2291_s6 + $0xc8] sm:$0xff] %v1183_v63  ;;  %v1566_v0 = vpop.f32.mrb[84].mxu0 }
 0x4af   :  { %v1567_v1 = vpop.f32.mrb[85].mxu0 }
 0x4b0   :  { %v1568_v2 = vadd.f32 %v1567_v1, %v1566_v0  ;;  %v1569_v3 = vpop.f32.mrb[86].mxu0 }
 0x4b1   :  { %v1570_v4 = vpop.f32.mrb[87].mxu0 }
 0x4b2   :  { %v1188_v5 = vadd.f32 %v1568_v2, %v2155_v12  ;;  %v1571_v6 = vadd.f32 %v1570_v4, %v1569_v3 }
 0x4b4   :  { %1236 = vst [vmem:[%s2291_s6 + $0xd0] sm:$0xff] %v1188_v5  ;;  %v1191_v7 = vadd.f32 %v1571_v6, %v2155_v12 }
 0x4b6   :  { %1237 = vst [vmem:[%s2291_s6 + $0xd8] sm:$0xff] %v1191_v7  ;;  %v1572_v8 = vpop.f32.mrb[88].mxu0 }
 0x4b7   :  { %v1573_v9 = vpop.f32.mrb[89].mxu0 }
 0x4b8   :  { %v1574_v13 = vadd.f32 %v1573_v9, %v1572_v8  ;;  %v1575_v38 = vpop.f32.mrb[90].mxu0 }
 0x4b9   :  { %v1576_v39 = vpop.f32.mrb[91].mxu0 }
 0x4ba   :  { %v1196_v42 = vadd.f32 %v1574_v13, %v2155_v12  ;;  %v1577_v49 = vadd.f32 %v1576_v39, %v1575_v38 }
 0x4bc   :  { %1238 = vst [vmem:[%s2291_s6 + $0xe0] sm:$0xff] %v1196_v42  ;;  %v1199_v52 = vadd.f32 %v1577_v49, %v2155_v12 }
 0x4be   :  { %1239 = vst [vmem:[%s2291_s6 + $0xe8] sm:$0xff] %v1199_v52  ;;  %v1578_v11 = vpop.f32.mrb[92].mxu0 }
 0x4bf   :  { %v1579_v14 = vpop.f32.mrb[93].mxu0 }
 0x4c0   :  { %v1580_v51 = vadd.f32 %v1579_v14, %v1578_v11  ;;  %v1581_v53 = vpop.f32.mrb[94].mxu0 }
 0x4c1   :  { %v1582_v55 = vpop.f32.mrb[95].mxu0 }
 0x4c2   :  { %v1204_v57 = vadd.f32 %v1580_v51, %v2155_v12  ;;  %v1583_v10 = vadd.f32 %v1582_v55, %v1581_v53 }
 0x4c4   :  { %1240 = vst [vmem:[%s2291_s6 + $0xf0] sm:$0xff] %v1204_v57  ;;  %v1207_v15 = vadd.f32 %v1583_v10, %v2155_v12 }
 0x4c6   :  { %1241 = vst [vmem:[%s2291_s6 + $0xf8] sm:$0xff] %v1207_v15 }

</bundles_post_ra>
